<compile_context>
chip_gen: v6e
topology: v6e:2x2x1
jax: 0.10.0
libtpu: 0.0.40
codegen_flags: <defaults>
</compile_context>

<pallas_src>
import jax
import jax.numpy as jnp
import numpy as np
from jax.experimental import pallas as pl
from jax.experimental.pallas import tpu as pltpu


def _round_up(x, m):
    return ((x + m - 1) // m) * m


def _cdiv(a, b):
    return (a + b - 1) // b


def decoder_kernel(x_ref, w1_ref, b1_ref, w2_ref, b2_ref, out_ref):
    # ----- fc1 on the packed [z|y] input: single bf16 x bf16 MXU pass, f32 acc -----
    h = jnp.dot(x_ref[...], w1_ref[...],
                preferred_element_type=jnp.float32) + b1_ref[...]

    # ----- ELU(alpha=1): expm1 on the clamped argument -> one EUP exp / element -----
    # (exp(x) - 1 cancellation near 0 is ~1e-7 abs; irrelevant after the sigmoid.)
    neg = jnp.minimum(h, 0.0)
    h = jnp.where(h > 0.0, h, jnp.exp(neg) - 1.0)

    # ----- fc2 + sigmoid (bf16 activations into the MXU, f32 accumulation) -----
    logits = jnp.dot(h.astype(jnp.bfloat16), w2_ref[...],
                     preferred_element_type=jnp.float32) + b2_ref[...]
    # sigmoid = 1 / (1 + exp(-x)); clamp so exp never overflows (sigmoid(-60) ~ 9e-27).
    d = 1.0 + jnp.exp(-jnp.maximum(logits, -60.0))
    r = pl.reciprocal(d, approx=True)      # EUP vrcp: rides a free VLIW slot
    r = r * (2.0 - d * r)                  # one Newton step -> full f32 precision
    out_ref[...] = r.astype(out_ref.dtype)


def _pick_tb(batch):
    """Batch tile: single tile for toy batches; otherwise >= 2 grid steps (so both
    v7x TensorCores get work) with the tile capped at 2048 rows (double-buffered
    bf16 tiles then stay far under v5e's 16 MiB default scoped VMEM)."""
    if batch <= 256:
        return _round_up(batch, 16)
    return min(2048, _round_up(_cdiv(batch, 2), 16))


@jax.jit
def decoder_forward(z, y_hard, params):
    """z: [B, latent_dim] f32, y_hard: [B, num_classes] f32 -> x_recon [B, output_dim] bf16."""
    B = z.shape[0]
    k_pad, hid_p = params["w1"].shape
    out_dim = params["w2"].shape[1]
    in_dim = z.shape[1] + y_hard.shape[1]

    # Fused, lane-dense fc1 input: [z | y_hard | 0 pad] in bf16 (one dot, one DMA stream).
    x = jnp.concatenate([z.astype(jnp.bfloat16), y_hard.astype(jnp.bfloat16)], axis=1)

    TB = _pick_tb(B)
    grid = _cdiv(B, TB)
    B_pad = grid * TB
    x = jnp.pad(x, ((0, B_pad - B), (0, k_pad - in_dim)))

    flops = 2 * B_pad * (k_pad * hid_p + hid_p * out_dim)
    transcendentals = B_pad * (hid_p + out_dim)          # one exp each (ELU, sigmoid)
    bytes_accessed = (
        2 * (k_pad * hid_p + hid_p * out_dim)            # bf16 weights
        + 4 * (hid_p + out_dim)                          # f32 biases
        + 2 * B_pad * (k_pad + out_dim)                  # bf16 activations in/out
    )

    x_recon = pl.pallas_call(
        decoder_kernel,
        out_shape=jax.ShapeDtypeStruct((B_pad, out_dim), jnp.bfloat16),
        grid=(grid,),
        in_specs=[
            pl.BlockSpec((TB, k_pad), lambda i: (i, 0)),       # packed [z|y], bf16
            pl.BlockSpec((k_pad, hid_p), lambda i: (0, 0)),    # W1, bf16 (VMEM-resident)
            pl.BlockSpec((1, hid_p), lambda i: (0, 0)),        # b1, f32
            pl.BlockSpec((hid_p, out_dim), lambda i: (0, 0)),  # W2, bf16 (VMEM-resident)
            pl.BlockSpec((1, out_dim), lambda i: (0, 0)),      # b2, f32
        ],
        out_specs=pl.BlockSpec((TB, out_dim), lambda i: (i, 0)),
        compiler_params=pltpu.CompilerParams(dimension_semantics=("parallel",)),
        cost_estimate=pl.CostEstimate(
            flops=flops, transcendentals=transcendentals, bytes_accessed=bytes_accessed
        ),
    )(x, params["w1"], params["b1"], params["w2"], params["b2"])
    return x_recon[:B]


def make_params(key, latent_dim, output_dim, num_classes, hidden=400):
    """PyTorch-style (uniform fan-in) Linear params; single fused W1, zero-padded to
    lane/sublane friendly shapes, weights stored in bfloat16 (padding is exact:
    ELU(0)=0, padded rows/cols are zero)."""
    k1, k2, k3, k4 = jax.random.split(key, 4)
    in1 = latent_dim + num_classes
    bnd1 = 1.0 / np.sqrt(in1)
    w1 = jax.random.uniform(k1, (in1, hidden), jnp.float32, -bnd1, bnd1)
    b1 = jax.random.uniform(k2, (1, hidden), jnp.float32, -bnd1, bnd1)
    bnd2 = 1.0 / np.sqrt(hidden)
    w2 = jax.random.uniform(k3, (hidden, output_dim), jnp.float32, -bnd2, bnd2)
    b2 = jax.random.uniform(k4, (1, output_dim), jnp.float32, -bnd2, bnd2)

    k_pad = _round_up(in1, 16)            # 30 -> 32
    hid_pad = _round_up(hidden, 128)      # 400 -> 512
    assert output_dim % 128 == 0, "output_dim must be a multiple of 128 for a dense store"

    w1p = jnp.zeros((k_pad, hid_pad), jnp.float32).at[:in1, :hidden].set(w1)
    b1p = jnp.zeros((1, hid_pad), jnp.float32).at[:, :hidden].set(b1)
    w2p = jnp.zeros((hid_pad, output_dim), jnp.float32).at[:hidden, :].set(w2)

    return {
        "w1": w1p.astype(jnp.bfloat16),
        "b1": b1p,
        "w2": w2p.astype(jnp.bfloat16),
        "b2": b2,
    }


def decoder_reference(z, y_hard, params):
    """Pure-JAX reference with the same bf16 input/weight/activation quantization and
    torch ELU / sigmoid semantics."""
    k_pad = params["w1"].shape[0]
    x = jnp.concatenate([z, y_hard], axis=1).astype(jnp.bfloat16)
    x = jnp.pad(x, ((0, 0), (0, k_pad - x.shape[1])))
    h = x.astype(jnp.float32) @ params["w1"].astype(jnp.float32) + params["b1"]
    h = jnp.where(h > 0.0, h, jnp.expm1(jnp.minimum(h, 0.0)))      # torch F.elu
    logits = (h.astype(jnp.bfloat16).astype(jnp.float32)
              @ params["w2"].astype(jnp.float32) + params["b2"])
    return jax.nn.sigmoid(logits)                                  # torch.sigmoid


if __name__ == "__main__":
    # Small shapes consistent with the module's forward.
    B = 8
    latent_dim = 20
    num_classes = 10
    output_dim = 256   # e.g. a flattened 16x16 reconstruction

    root = jax.random.PRNGKey(0)
    kz, ky, kp = jax.random.split(root, 3)

    z = jax.random.normal(kz, (B, latent_dim), jnp.float32)
    y_idx = jax.random.randint(ky, (B,), 0, num_classes)
    y_hard = jax.nn.one_hot(y_idx, num_classes, dtype=jnp.float32)

    params = make_params(kp, latent_dim, output_dim, num_classes)

    x_recon = decoder_forward(z, y_hard, params)
    jax.block_until_ready(x_recon)

    ref = decoder_reference(z, y_hard, params)
    np.testing.assert_allclose(np.asarray(x_recon.astype(jnp.float32)),
                               np.asarray(ref, dtype=np.float32),
                               rtol=2e-2, atol=4e-3)

    print("KERNEL_OK")
</pallas_src>

<mosaic_0001>
module attributes {stable_mosaic.version = 11 : i64} {
  func.func @decoder_kernel(%arg0: i32, %arg1: memref<16x32xbf16, #tpu.memory_space<vmem>>, %arg2: memref<32x512xbf16, #tpu.memory_space<vmem>>, %arg3: memref<1x512xf32, #tpu.memory_space<vmem>>, %arg4: memref<512x256xbf16, #tpu.memory_space<vmem>>, %arg5: memref<1x256xf32, #tpu.memory_space<vmem>>, %arg6: memref<16x256xbf16, #tpu.memory_space<vmem>>) attributes {dimension_semantics = [#tpu.dimension_semantics<parallel>], iteration_bounds = array<i64: 1>, scalar_prefetch = 0 : i64, scratch_operands = 0 : i64, tpu.core_type = #tpu.core_type<tc>, window_params = [{transform_indices = @transform_0, window_bounds = array<i64: 16, 32>}, {pipeline_mode = #tpu.pipeline_mode<synchronous>, transform_indices = @transform_1, window_bounds = array<i64: 32, 512>}, {pipeline_mode = #tpu.pipeline_mode<synchronous>, transform_indices = @transform_2, window_bounds = array<i64: 1, 512>}, {pipeline_mode = #tpu.pipeline_mode<synchronous>, transform_indices = @transform_3, window_bounds = array<i64: 512, 256>}, {pipeline_mode = #tpu.pipeline_mode<synchronous>, transform_indices = @transform_4, window_bounds = array<i64: 1, 256>}, {transform_indices = @transform_5, window_bounds = array<i64: 16, 256>}]} {
    %c0 = arith.constant 0 : index
    %c0_0 = arith.constant 0 : index
    %0 = vector.load %arg1[%c0, %c0_0] : memref<16x32xbf16, #tpu.memory_space<vmem>>, vector<16x32xbf16>
    %c0_1 = arith.constant 0 : index
    %c0_2 = arith.constant 0 : index
    %1 = vector.load %arg2[%c0_1, %c0_2] : memref<32x512xbf16, #tpu.memory_space<vmem>>, vector<32x512xbf16>
    %cst = arith.constant dense<0.000000e+00> : vector<16x512xf32>
    %2 = tpu.matmul %0, %1, %cst {dimension_numbers = #tpu.dot_dimension_numbers<[1], [0], [0], [1], [0, 0, 1, 1], [], []>} : vector<16x32xbf16>, vector<32x512xbf16>, vector<16x512xf32> -> vector<16x512xf32>
    %c0_3 = arith.constant 0 : index
    %c0_4 = arith.constant 0 : index
    %3 = vector.load %arg3[%c0_3, %c0_4] : memref<1x512xf32, #tpu.memory_space<vmem>>, vector<1x512xf32>
    %4 = vector.broadcast %3 : vector<1x512xf32> to vector<16x512xf32>
    %5 = arith.addf %2, %4 : vector<16x512xf32>
    %cst_5 = arith.constant 0.000000e+00 : f32
    %6 = vector.broadcast %cst_5 : f32 to vector<16x512xf32>
    %7 = arith.minimumf %5, %6 : vector<16x512xf32>
    %cst_6 = arith.constant 0.000000e+00 : f32
    %8 = vector.broadcast %cst_6 : f32 to vector<16x512xf32>
    %9 = arith.cmpf ogt, %5, %8 : vector<16x512xf32>
    %10 = math.exp %7 : vector<16x512xf32>
    %cst_7 = arith.constant 1.000000e+00 : f32
    %11 = vector.broadcast %cst_7 : f32 to vector<16x512xf32>
    %12 = arith.subf %10, %11 : vector<16x512xf32>
    %13 = arith.select %9, %5, %12 : vector<16x512xi1>, vector<16x512xf32>
    %14 = arith.truncf %13 : vector<16x512xf32> to vector<16x512xbf16>
    %c0_8 = arith.constant 0 : index
    %c0_9 = arith.constant 0 : index
    %15 = vector.load %arg4[%c0_8, %c0_9] : memref<512x256xbf16, #tpu.memory_space<vmem>>, vector<512x256xbf16>
    %cst_10 = arith.constant dense<0.000000e+00> : vector<16x256xf32>
    %16 = tpu.matmul %14, %15, %cst_10 {dimension_numbers = #tpu.dot_dimension_numbers<[1], [0], [0], [1], [0, 0, 1, 1], [], []>} : vector<16x512xbf16>, vector<512x256xbf16>, vector<16x256xf32> -> vector<16x256xf32>
    %c0_11 = arith.constant 0 : index
    %c0_12 = arith.constant 0 : index
    %17 = vector.load %arg5[%c0_11, %c0_12] : memref<1x256xf32, #tpu.memory_space<vmem>>, vector<1x256xf32>
    %18 = vector.broadcast %17 : vector<1x256xf32> to vector<16x256xf32>
    %19 = arith.addf %16, %18 : vector<16x256xf32>
    %cst_13 = arith.constant -6.000000e+01 : f32
    %20 = vector.broadcast %cst_13 : f32 to vector<16x256xf32>
    %21 = arith.maximumf %19, %20 : vector<16x256xf32>
    %cst_14 = arith.constant 0.000000e+00 : f32
    %22 = vector.broadcast %cst_14 : f32 to vector<16x256xf32>
    %23 = arith.subf %22, %21 : vector<16x256xf32>
    %24 = math.exp %23 : vector<16x256xf32>
    %cst_15 = arith.constant 1.000000e+00 : f32
    %25 = vector.broadcast %cst_15 : f32 to vector<16x256xf32>
    %26 = arith.addf %25, %24 : vector<16x256xf32>
    %27 = tpu.reciprocal %26 {approx = true} : vector<16x256xf32> -> vector<16x256xf32>
    %28 = arith.mulf %26, %27 : vector<16x256xf32>
    %cst_16 = arith.constant 2.000000e+00 : f32
    %29 = vector.broadcast %cst_16 : f32 to vector<16x256xf32>
    %30 = arith.subf %29, %28 : vector<16x256xf32>
    %31 = arith.mulf %27, %30 : vector<16x256xf32>
    %32 = arith.truncf %31 : vector<16x256xf32> to vector<16x256xbf16>
    %c0_17 = arith.constant 0 : index
    %c0_18 = arith.constant 0 : index
    %33 = vector.load %arg6[%c0_17, %c0_18] : memref<16x256xbf16, #tpu.memory_space<vmem>>, vector<16x256xbf16>
    tpu.vector_store %arg6[%c0_17, %c0_18], %32 {strides = array<i32>} : memref<16x256xbf16, #tpu.memory_space<vmem>>, vector<16x256xbf16>,
    return
  }
  func.func @transform_0(%arg0: i32) -> (i32, i32) {
    %c0_i32 = arith.constant 0 : i32
    %c0_i32_0 = arith.constant 0 : i32
    return %arg0, %c0_i32 : i32, i32
  }
  func.func @transform_1(%arg0: i32) -> (i32, i32) {
    %c0_i32 = arith.constant 0 : i32
    %c0_i32_0 = arith.constant 0 : i32
    %c0_i32_1 = arith.constant 0 : i32
    return %c0_i32, %c0_i32_0 : i32, i32
  }
  func.func @transform_2(%arg0: i32) -> (i32, i32) {
    %c0_i32 = arith.constant 0 : i32
    %c0_i32_0 = arith.constant 0 : i32
    %c0_i32_1 = arith.constant 0 : i32
    return %c0_i32, %c0_i32_0 : i32, i32
  }
  func.func @transform_3(%arg0: i32) -> (i32, i32) {
    %c0_i32 = arith.constant 0 : i32
    %c0_i32_0 = arith.constant 0 : i32
    %c0_i32_1 = arith.constant 0 : i32
    return %c0_i32, %c0_i32_0 : i32, i32
  }
  func.func @transform_4(%arg0: i32) -> (i32, i32) {
    %c0_i32 = arith.constant 0 : i32
    %c0_i32_0 = arith.constant 0 : i32
    %c0_i32_1 = arith.constant 0 : i32
    return %c0_i32, %c0_i32_0 : i32, i32
  }
  func.func @transform_5(%arg0: i32) -> (i32, i32) {
    %c0_i32 = arith.constant 0 : i32
    %c0_i32_0 = arith.constant 0 : i32
    return %arg0, %c0_i32 : i32, i32
  }
}

</mosaic_0001>

<bundles_post_ra>
// kernel: decoder_forward.1
= control target key start
LH: loop header
LB: loop body
LE: loop exit
PB: predicated region body
PF: predicated region fallthrough
CT: control target
= control target key end

     0   :  { %10 = vsyncpa [#allocation3], 0  ;;  %s1171_s0 = inlined_call_operand.vmem [shape: bf16[16,32], index: 0, kind: input, shape index: {}]   ;;  %s1172_s1 = inlined_call_operand.hbm [shape: bf16[32,512], index: 1, kind: input, shape index: {}]   ;;  %s1173_s2 = inlined_call_operand.vmem [shape: f32[1,512], index: 2, kind: input, shape index: {}]   ;;  %s1174_s3 = inlined_call_operand.hbm [shape: bf16[512,256], index: 3, kind: input, shape index: {}]   ;;  %s1175_s4 = inlined_call_operand.vmem [shape: f32[1,256], index: 4, kind: input, shape index: {}]   ;;  %s1176_s5 = inlined_call_operand.vmem [shape: bf16[16,256], index: 5, kind: output, shape index: {}]  }
   0x1   :  { %11 = vsyncpa [#allocation5], 0  ;;  %s1085_s18 = smov [#allocation2]  }
   0x2   :  { %s19_s19 = sshll.u32 %s1085_s18, 4  ;;  %s20_s19 = int_to_ptr.vmem [resolvable:$true] %s19_s19 }
   0x3   :  { %s1049_s20 = scalar_lea.vmem %s20_s19, 1024  ;;  %p1054_p1 = scmp.lt.s32.totalorder %s20_s19, %s20_s19 }
   0x4   :  { %p1050_p0 = scmp.ne.s32.totalorder %s20_s19, %s1049_s20  ;;  %p1055_p2 = scmp.lt.s32.totalorder %s1049_s20, %s1049_s20 }
   0x6   :  { %p1056_p3 = por %p1055_p2, %p1054_p1 }
   0x8   :  { %p1057_p4 = pnand %p1056_p3, %p1050_p0 }
   0xa   :  { %1060 = shalt.err (!%p1057_p4)
}
   0xb   :  { %s1086_s21 = smov 256   ;;  %s1087_s22 = smov 16  }
   0xc   :  { %25 = dma.hbm_to_vmem [thread:$0]  %s1172_s1, 1024, %s20_s19, [#allocation3], %s1086_s21, %s1086_s21, %s1087_s22  }
   0xd   :  { %s1088_s25 = smov [#allocation4]  }
   0xe   :  { %s33_s26 = sshll.u32 %s1088_s25, 4  ;;  %s34_s26 = int_to_ptr.vmem [resolvable:$true] %s33_s26 }
   0xf   :  { %s1069_s27 = scalar_lea.vmem %s34_s26, 8192  ;;  %p1074_p6 = scmp.lt.s32.totalorder %s34_s26, %s34_s26 }
  0x10   :  { %p1070_p5 = scmp.ne.s32.totalorder %s34_s26, %s1069_s27  ;;  %p1075_p7 = scmp.lt.s32.totalorder %s1069_s27, %s1069_s27 }
  0x12   :  { %p1076_p8 = por %p1075_p7, %p1074_p6 }
  0x14   :  { %p1077_p9 = pnand %p1076_p8, %p1070_p5 }
  0x16   :  { %1080 = shalt.err (!%p1077_p9)
}
  0x17   :  { %s1089_s28 = smov 128   ;;  %s1090_s29 = smov 8  }
  0x18   :  { %39 = dma.hbm_to_vmem [thread:$0]  %s1174_s3, 8192, %s34_s26, [#allocation5], %s1089_s28, %s1089_s28, %s1090_s29  }
  0x19   :  { %1081 = dma.done.wait [#allocation3], 1024  }
  0x1a   :  { %1082 = vsyncadd [#allocation3], 4294966272 }
  0x1b   :  { %1083 = dma.done.wait [#allocation5], 8192  }
  0x1c   :  { %1084 = vsyncadd [#allocation5], 4294959104  ;;  %v1091_v0 = vmov 0   ;;  %v900_v1 = vld [vmem:[#allocation2 + $0x24] ss:$16 sps:$4 sm:$0xff]   ;;  %vm126_vm0 = vcmask 261120  }
  0x1d   :  { %162 = vmatprep.mubr.bf16.mxu0 %v1091_v0  ;;  %205 = vmatprep.mubr.bf16.mxu1 %v1091_v0  ;;  %v902_v2 = vld [vmem:[#allocation2 + $0x2c] ss:$16 sps:$4 sm:$0xff]   ;;  %v904_v3 = vld [vmem:[#allocation2 + $0x20] ss:$16 sps:$4 sm:$0xff]   ;;  %v905_v4 = vld [vmem:[#allocation2 + $0x28] ss:$16 sps:$4 sm:$0xff]  }
  0x1e   :  { %142 = vmatprep.subr.bf16.mxu0 %v900_v1  ;;  %185 = vmatprep.subr.bf16.mxu1 %v902_v2  ;;  %v906_v5 = vld [vmem:[#allocation2 + $0x4] ss:$16 sps:$4 sm:$0xff]   ;;  %v908_v6 = vld [vmem:[#allocation2 + $0xc] ss:$16 sps:$4 sm:$0xff]   ;;  %v910_v7 = vld [vmem:[#allocation2] ss:$16 sps:$4 sm:$0xff]  }
  0x1f   :  { %143 = vmatpush1.bf16.msra.mxu0 %v904_v3  ;;  %186 = vmatpush1.bf16.msra.mxu1 %v905_v4  ;;  %v911_v8 = vld [vmem:[#allocation2 + $0x8] ss:$16 sps:$4 sm:$0xff]   ;;  %v912_v9 = vld [vmem:[%s1171_s0] sm:$0xff]   ;;  %v915_v11 = vld [vmem:[#allocation4 + $0x74] ss:$8 sps:$4 sm:$0xff]  }
  0x20   :  { %144 = vmatprep.subr.bf16.mxu0 %v906_v5  ;;  %187 = vmatprep.subr.bf16.mxu1 %v908_v6  ;;  %v913_v10 = vld [vmem:[#allocation4 + $0x70] ss:$8 sps:$4 sm:$0xff]   ;;  %v918_v13 = vld [vmem:[#allocation4 + $0x174] ss:$8 sps:$4 sm:$0xff]   ;;  %v921_v14 = vld [vmem:[#allocation4 + $0x64] ss:$8 sps:$4 sm:$0xff]  }
  0x21   :  { %v916_v12 = vld [vmem:[#allocation4 + $0x170] ss:$8 sps:$4 sm:$0xff]   ;;  %v924_v15 = vld [vmem:[#allocation4 + $0x164] ss:$8 sps:$4 sm:$0xff]   ;;  %v919_v16 = vld [vmem:[#allocation4 + $0x60] ss:$8 sps:$4 sm:$0xff]  }
  0x22   :  { %v922_v17 = vld [vmem:[#allocation4 + $0x160] ss:$8 sps:$4 sm:$0xff]   ;;  %v927_v18 = vld [vmem:[#allocation4 + $0x54] ss:$8 sps:$4 sm:$0xff]   ;;  %v925_v20 = vld [vmem:[#allocation4 + $0x50] ss:$8 sps:$4 sm:$0xff]  }
  0x23   :  { %145 = vmatpush1.bf16.msra.mxu0 %v910_v7  ;;  %188 = vmatpush1.bf16.msra.mxu1 %v911_v8  ;;  %v930_v19 = vld [vmem:[#allocation4 + $0x154] ss:$8 sps:$4 sm:$0xff]   ;;  %v928_v21 = vld [vmem:[#allocation4 + $0x150] ss:$8 sps:$4 sm:$0xff]   ;;  %v933_v22 = vld [vmem:[#allocation4 + $0x44] ss:$8 sps:$4 sm:$0xff]  }
  0x24   :  { %664 = vmatprep.subr.bf16.mxu0 %v915_v11  ;;  %707 = vmatprep.subr.bf16.mxu1 %v918_v13  ;;  %v936_v23 = vld [vmem:[#allocation4 + $0x144] ss:$8 sps:$4 sm:$0xff]   ;;  %v931_v24 = vld [vmem:[#allocation4 + $0x40] ss:$8 sps:$4 sm:$0xff]   ;;  %v939_v26 = vld [vmem:[#allocation4 + $0x34] ss:$8 sps:$4 sm:$0xff]  }
  0x25   :  { %v934_v25 = vld [vmem:[#allocation4 + $0x140] ss:$8 sps:$4 sm:$0xff]   ;;  %v942_v27 = vld [vmem:[#allocation4 + $0x134] ss:$8 sps:$4 sm:$0xff]   ;;  %v937_v28 = vld [vmem:[#allocation4 + $0x30] ss:$8 sps:$4 sm:$0xff]  }
  0x26   :  { %815 = vmatmul.mubr.msk.bf16.vlgmr.msra.gmra.mxu0 %vm126_vm0, %v912_v9  ;;  %816 = vmatmul.mubr.msk.bf16.vlgmr.msra.gmra.mxu1 %vm126_vm0, %v912_v9  ;;  %v940_v29 = vld [vmem:[#allocation4 + $0x130] ss:$8 sps:$4 sm:$0xff]   ;;  %v945_v30 = vld [vmem:[#allocation4 + $0x24] ss:$8 sps:$4 sm:$0xff]   ;;  %v943_v32 = vld [vmem:[#allocation4 + $0x20] ss:$8 sps:$4 sm:$0xff]  }
  0x27   :  { %665 = vmatpush1.bf16.msra.mxu0 %v913_v10  ;;  %708 = vmatpush1.bf16.msra.mxu1 %v916_v12  ;;  %v948_v31 = vld [vmem:[#allocation4 + $0x124] ss:$8 sps:$4 sm:$0xff]   ;;  %v946_v33 = vld [vmem:[#allocation4 + $0x120] ss:$8 sps:$4 sm:$0xff]   ;;  %v951_v34 = vld [vmem:[#allocation4 + $0x14] ss:$8 sps:$4 sm:$0xff]   ;;  %v61_v10 = vlaneseq }
  0x28   :  { %666 = vmatprep.subr.bf16.mxu0 %v921_v14  ;;  %709 = vmatprep.subr.bf16.mxu1 %v924_v15  ;;  %v954_v35 = vld [vmem:[#allocation4 + $0x114] ss:$8 sps:$4 sm:$0xff]   ;;  %v949_v36 = vld [vmem:[#allocation4 + $0x10] ss:$8 sps:$4 sm:$0xff]   ;;  %v957_v38 = vld [vmem:[#allocation4 + $0x4] ss:$8 sps:$4 sm:$0xff]  }
  0x29   :  { %v952_v37 = vld [vmem:[#allocation4 + $0x110] ss:$8 sps:$4 sm:$0xff]   ;;  %v960_v39 = vld [vmem:[#allocation4 + $0x104] ss:$8 sps:$4 sm:$0xff]   ;;  %v955_v40 = vld [vmem:[#allocation4] ss:$8 sps:$4 sm:$0xff]  }
  0x2a   :  { %v958_v41 = vld [vmem:[#allocation4 + $0x100] ss:$8 sps:$4 sm:$0xff]   ;;  %v963_v42 = vld [vmem:[#allocation4 + $0xf4] ss:$8 sps:$4 sm:$0xff]   ;;  %v961_v44 = vld [vmem:[#allocation4 + $0xf0] ss:$8 sps:$4 sm:$0xff]  }
  0x2b   :  { %667 = vmatpush1.bf16.msra.mxu0 %v919_v16  ;;  %710 = vmatpush1.bf16.msra.mxu1 %v922_v17  ;;  %v966_v43 = vld [vmem:[#allocation4 + $0x1f4] ss:$8 sps:$4 sm:$0xff]   ;;  %v964_v45 = vld [vmem:[#allocation4 + $0x1f0] ss:$8 sps:$4 sm:$0xff]   ;;  %v969_v46 = vld [vmem:[#allocation4 + $0xe4] ss:$8 sps:$4 sm:$0xff]  }
  0x2c   :  { %668 = vmatprep.subr.bf16.mxu0 %v927_v18  ;;  %711 = vmatprep.subr.bf16.mxu1 %v930_v19  ;;  %v972_v47 = vld [vmem:[#allocation4 + $0x1e4] ss:$8 sps:$4 sm:$0xff]   ;;  %v967_v48 = vld [vmem:[#allocation4 + $0xe0] ss:$8 sps:$4 sm:$0xff]   ;;  %v975_v50 = vld [vmem:[#allocation4 + $0xd4] ss:$8 sps:$4 sm:$0xff]  }
  0x2d   :  { %v970_v49 = vld [vmem:[#allocation4 + $0x1e0] ss:$8 sps:$4 sm:$0xff]   ;;  %v978_v51 = vld [vmem:[#allocation4 + $0x1d4] ss:$8 sps:$4 sm:$0xff]   ;;  %v973_v52 = vld [vmem:[#allocation4 + $0xd0] ss:$8 sps:$4 sm:$0xff]  }
  0x2e   :  { %v976_v53 = vld [vmem:[#allocation4 + $0x1d0] ss:$8 sps:$4 sm:$0xff]   ;;  %v981_v54 = vld [vmem:[#allocation4 + $0xc4] ss:$8 sps:$4 sm:$0xff]   ;;  %v979_v56 = vld [vmem:[#allocation4 + $0xc0] ss:$8 sps:$4 sm:$0xff]  }
  0x2f   :  { %669 = vmatpush1.bf16.msra.mxu0 %v925_v20  ;;  %712 = vmatpush1.bf16.msra.mxu1 %v928_v21  ;;  %v984_v55 = vld [vmem:[#allocation4 + $0x1c4] ss:$8 sps:$4 sm:$0xff]   ;;  %v982_v57 = vld [vmem:[#allocation4 + $0x1c0] ss:$8 sps:$4 sm:$0xff]   ;;  %v987_v58 = vld [vmem:[#allocation4 + $0xb4] ss:$8 sps:$4 sm:$0xff]  }
  0x30   :  { %670 = vmatprep.subr.bf16.mxu0 %v933_v22  ;;  %713 = vmatprep.subr.bf16.mxu1 %v936_v23  ;;  %v990_v59 = vld [vmem:[#allocation4 + $0x1b4] ss:$8 sps:$4 sm:$0xff]   ;;  %v985_v60 = vld [vmem:[#allocation4 + $0xb0] ss:$8 sps:$4 sm:$0xff]   ;;  %v993_v62 = vld [vmem:[#allocation4 + $0xa4] ss:$8 sps:$4 sm:$0xff]  }
  0x31   :  { %v988_v61 = vld [vmem:[#allocation4 + $0x1b0] ss:$8 sps:$4 sm:$0xff]   ;;  %v996_v63 = vld [vmem:[#allocation4 + $0x1a4] ss:$8 sps:$4 sm:$0xff]   ;;  %v991_v0 = vld [vmem:[#allocation4 + $0xa0] ss:$8 sps:$4 sm:$0xff]  }
  0x32   :  { %v994_v1 = vld [vmem:[#allocation4 + $0x1a0] ss:$8 sps:$4 sm:$0xff]   ;;  %v999_v2 = vld [vmem:[#allocation4 + $0x94] ss:$8 sps:$4 sm:$0xff]   ;;  %v997_v4 = vld [vmem:[#allocation4 + $0x90] ss:$8 sps:$4 sm:$0xff]  }
  0x33   :  { %671 = vmatpush1.bf16.msra.mxu0 %v931_v24  ;;  %714 = vmatpush1.bf16.msra.mxu1 %v934_v25  ;;  %v1002_v3 = vld [vmem:[#allocation4 + $0x194] ss:$8 sps:$4 sm:$0xff]   ;;  %v1000_v5 = vld [vmem:[#allocation4 + $0x190] ss:$8 sps:$4 sm:$0xff]   ;;  %v1003_v6 = vld [vmem:[#allocation4 + $0x80] ss:$8 sps:$4 sm:$0xff]  }
  0x34   :  { %672 = vmatprep.subr.bf16.mxu0 %v939_v26  ;;  %715 = vmatprep.subr.bf16.mxu1 %v942_v27  ;;  %v1005_v7 = vld [vmem:[#allocation4 + $0x84] ss:$8 sps:$4 sm:$0xff]   ;;  %v1006_v8 = vld [vmem:[#allocation4 + $0x180] ss:$8 sps:$4 sm:$0xff]   ;;  %v1131_v11 = vshrl.u32 %v61_v10, 7 }
  0x35   :  { %v1008_v9 = vld [vmem:[#allocation4 + $0x184] ss:$8 sps:$4 sm:$0xff]   ;;  %v59_v14 = vld [vmem:[%s1173_s2] sm:$0xf] }
  0x36   :  { %v63_v12 = vsub.s32 0, %v1131_v11  ;;  %v71_v13 = vsub.s32 2, %v1131_v11  ;;  %v67_v15 = vsub.s32 1, %v1131_v11  ;;  %v75_v16 = vsub.s32 3, %v1131_v11 }
  0x37   :  { %673 = vmatpush1.bf16.msra.mxu0 %v937_v28  ;;  %716 = vmatpush1.bf16.msra.mxu1 %v940_v29 }
  0x38   :  { %674 = vmatprep.subr.bf16.mxu0 %v945_v30  ;;  %717 = vmatprep.subr.bf16.mxu1 %v948_v31  ;;  %v64_v17 = vrot.slane %v59_v14, %v63_v12  ;;  %v72_v18 = vrot.slane %v59_v14, %v71_v13  ;;  %v68_v21 = vrot.slane %v59_v14, %v67_v15 }
  0x39   :  { %v76_v22 = vrot.slane %v59_v14, %v75_v16 }
  0x3b   :  { %675 = vmatpush1.bf16.msra.mxu0 %v943_v32  ;;  %718 = vmatpush1.bf16.msra.mxu1 %v946_v33 }
  0x3c   :  { %676 = vmatprep.subr.bf16.mxu0 %v951_v34  ;;  %719 = vmatprep.subr.bf16.mxu1 %v954_v35 }
  0x3f   :  { %677 = vmatpush1.bf16.msra.mxu0 %v949_v36  ;;  %720 = vmatpush1.bf16.msra.mxu1 %v952_v37 }
  0x40   :  { %678 = vmatprep.subr.bf16.mxu0 %v957_v38  ;;  %721 = vmatprep.subr.bf16.mxu1 %v960_v39 }
  0x43   :  { %679 = vmatpush1.bf16.msra.mxu0 %v955_v40  ;;  %722 = vmatpush1.bf16.msra.mxu1 %v958_v41 }
  0x44   :  { %680 = vmatprep.subr.bf16.mxu0 %v963_v42  ;;  %723 = vmatprep.subr.bf16.mxu1 %v966_v43 }
  0x47   :  { %681 = vmatpush2.bf16.msra.mxu0 %v961_v44  ;;  %724 = vmatpush2.bf16.msra.mxu1 %v964_v45 }
  0x48   :  { %682 = vmatprep.subr.bf16.mxu0 %v969_v46  ;;  %725 = vmatprep.subr.bf16.mxu1 %v972_v47 }
  0x4b   :  { %683 = vmatpush2.bf16.msra.mxu0 %v967_v48  ;;  %726 = vmatpush2.bf16.msra.mxu1 %v970_v49 }
  0x4c   :  { %684 = vmatprep.subr.bf16.mxu0 %v975_v50  ;;  %727 = vmatprep.subr.bf16.mxu1 %v978_v51 }
  0x4f   :  { %685 = vmatpush2.bf16.msra.mxu0 %v973_v52  ;;  %728 = vmatpush2.bf16.msra.mxu1 %v976_v53 }
  0x50   :  { %686 = vmatprep.subr.bf16.mxu0 %v981_v54  ;;  %729 = vmatprep.subr.bf16.mxu1 %v984_v55 }
  0x53   :  { %687 = vmatpush2.bf16.msra.mxu0 %v979_v56  ;;  %730 = vmatpush2.bf16.msra.mxu1 %v982_v57 }
  0x54   :  { %688 = vmatprep.subr.bf16.mxu0 %v987_v58  ;;  %731 = vmatprep.subr.bf16.mxu1 %v990_v59 }
  0x57   :  { %689 = vmatpush2.bf16.msra.mxu0 %v985_v60  ;;  %732 = vmatpush2.bf16.msra.mxu1 %v988_v61 }
  0x58   :  { %690 = vmatprep.subr.bf16.mxu0 %v993_v62  ;;  %733 = vmatprep.subr.bf16.mxu1 %v996_v63 }
  0x5b   :  { %691 = vmatpush2.bf16.msra.mxu0 %v991_v0  ;;  %734 = vmatpush2.bf16.msra.mxu1 %v994_v1 }
  0x5c   :  { %692 = vmatprep.subr.bf16.mxu0 %v999_v2  ;;  %735 = vmatprep.subr.bf16.mxu1 %v1002_v3 }
  0x5f   :  { %693 = vmatpush2.bf16.msra.mxu0 %v997_v4  ;;  %736 = vmatpush2.bf16.msra.mxu1 %v1000_v5 }
  0x60   :  { %694 = vmatprep.subr.bf16.mxu0 %v1005_v7  ;;  %737 = vmatprep.subr.bf16.mxu1 %v1008_v9 }
  0x63   :  { %695 = vmatpush2.bf16.msra.mxu0 %v1003_v6  ;;  %738 = vmatpush2.bf16.msra.mxu1 %v1006_v8 }
  0xe6   :  { %v164_v19 = vpop.f32.mrf.mxu0  ;;  %v207_v20 = vpop.f32.mrf.mxu1 }
  0xe7   :  { %v1144_v23 = vadd.f32 %v164_v19, %v64_v17  ;;  %v1146_v24 = vadd.f32 %v207_v20, %v72_v18  ;;  %v332_v20 = vld [vmem:[%s1175_s4] sm:$0x3] }
  0xe8   :  { %v166_v25 = vpop.f32.mrf.mxu0  ;;  %v209_v26 = vpop.f32.mrf.mxu1 }
  0xe9   :  { %v216_v27 = vmin.f32 %v1144_v23, 0.0  ;;  %v218_v28 = vmin.f32 %v1146_v24, 0.0  ;;  %v167_v29 = vadd.f32 %v166_v25, %v68_v21  ;;  %v210_v30 = vadd.f32 %v209_v26, %v76_v22 }
  0xea   :  { %v168_v31 = vpop.f32.mrf.mxu0  ;;  %v211_v32 = vpop.f32.mrf.mxu1  ;;  %vm224_vm1 = vcmp.gt.f32.partialorder %v1144_v23, 0.0  ;;  %vm226_vm2 = vcmp.gt.f32.partialorder %v1146_v24, 0.0 }
  0xeb   :  { %v232_v33 = vmul.f32 1.442695, %v216_v27  ;;  %v236_v34 = vmul.f32 1.442695, %v218_v28  ;;  %v169_v35 = vadd.f32 %v168_v31, %v64_v17  ;;  %v212_v36 = vadd.f32 %v211_v32, %v72_v18 }
  0xec   :  { %v217_v37 = vmin.f32 %v167_v29, 0.0  ;;  %v219_v38 = vmin.f32 %v210_v30, 0.0  ;;  %v170_v39 = vpop.f32.mrf.mxu0  ;;  %v213_v40 = vpop.f32.mrf.mxu1  ;;  %vm225_vm3 = vcmp.gt.f32.partialorder %v167_v29, 0.0  ;;  %vm227_vm4 = vcmp.gt.f32.partialorder %v210_v30, 0.0 }
  0xed   :  { %1009 = vpow2.f32 %v232_v33  ;;  %v220_v41 = vmin.f32 %v169_v35, 0.0  ;;  %v222_v42 = vmin.f32 %v212_v36, 0.0  ;;  %v171_v47 = vadd.f32 %v170_v39, %v68_v21 }
  0xee   :  { %1011 = vpow2.f32 %v236_v34  ;;  %v234_v43 = vmul.f32 1.442695, %v217_v37  ;;  %v238_v44 = vmul.f32 1.442695, %v219_v38  ;;  %v214_v48 = vadd.f32 %v213_v40, %v76_v22 }
  0xef   :  { %v240_v45 = vmul.f32 1.442695, %v220_v41  ;;  %v244_v46 = vmul.f32 1.442695, %v222_v42  ;;  %v221_v49 = vmin.f32 %v171_v47, 0.0  ;;  %vm228_vm5 = vcmp.gt.f32.partialorder %v169_v35, 0.0 }
  0xf0   :  { %1013 = vpow2.f32 %v234_v43  ;;  %v223_v50 = vmin.f32 %v214_v48, 0.0  ;;  %vm230_vm6 = vcmp.gt.f32.partialorder %v212_v36, 0.0  ;;  %vm229_vm7 = vcmp.gt.f32.partialorder %v171_v47, 0.0 }
  0xf1   :  { %1015 = vpow2.f32 %v238_v44  ;;  %v242_v51 = vmul.f32 1.442695, %v221_v49  ;;  %vm231_vm8 = vcmp.gt.f32.partialorder %v214_v48, 0.0  ;;  %v337_v21 = vrot.slane %v332_v20, %v63_v12 }
  0xf2   :  { %1017 = vpow2.f32 %v240_v45  ;;  %v246_v52 = vmul.f32 1.442695, %v223_v50  ;;  %v341_v22 = vrot.slane %v332_v20, %v67_v15 }
  0xf3   :  { %1019 = vpow2.f32 %v244_v46 }
  0xf4   :  { %1021 = vpow2.f32 %v242_v51 }
  0xf5   :  { %1023 = vpow2.f32 %v246_v52 }
  0xfa   :  { %v1010_v53 = vpop.eup %1009 }
  0xfb   :  { %v1012_v54 = vpop.eup %1011  ;;  %v817_v63 = vadd.f32 -1.0, %v1010_v53 }
  0xfc   :  { %v819_v2 = vadd.f32 -1.0, %v1012_v54 }
  0xfd   :  { %v1014_v55 = vpop.eup %1013  ;;  %v256_v9 = vsel %vm224_vm1, %v1144_v23, %v817_v63 }
  0xfe   :  { %v1016_v56 = vpop.eup %1015  ;;  %v818_v61 = vadd.f32 -1.0, %v1014_v55  ;;  %v258_v16 = vsel %vm226_vm2, %v1146_v24, %v819_v2 }
  0xff   :  { %v1018_v57 = vpop.eup %1017  ;;  %v820_v0 = vadd.f32 -1.0, %v1016_v56 }
 0x100   :  { %v1020_v58 = vpop.eup %1019  ;;  %v821_v59 = vadd.f32 -1.0, %v1018_v57  ;;  %v257_v7 = vsel %vm225_vm3, %v167_v29, %v818_v61 }
 0x101   :  { %v823_v60 = vadd.f32 -1.0, %v1020_v58  ;;  %v1022_v62 = vpop.eup %1021  ;;  %v259_v13 = vsel %vm227_vm4, %v210_v30, %v820_v0 }
 0x102   :  { %v1024_v1 = vpop.eup %1023  ;;  %v822_v3 = vadd.f32 -1.0, %v1022_v62  ;;  %v260_v4 = vsel %vm228_vm5, %v169_v35, %v821_v59 }
 0x103   :  { %v824_v5 = vadd.f32 -1.0, %v1024_v1  ;;  %v262_v6 = vsel %vm230_vm6, %v212_v36, %v823_v60  ;;  %v264_v17 = vpack.c.bf16 %v260_v4, %v256_v9 }
 0x104   :  { %v261_v8 = vsel %vm229_vm7, %v171_v47, %v822_v3  ;;  %v266_v19 = vpack.c.bf16 %v262_v6, %v258_v16 }
 0x105   :  { %v265_v10 = vpack.c.bf16 %v261_v8, %v257_v7  ;;  %v263_v14 = vsel %vm231_vm8, %v214_v48, %v824_v5 }
 0x106   :  { %v267_v18 = vpack.c.bf16 %v263_v14, %v259_v13 }
 0x107   :  { %696 = vmatprep.mubr.bf16.mxu0 %v265_v10 }
 0x108   :  { %739 = vmatprep.mubr.bf16.mxu1 %v267_v18  ;;  %697 = vmatmul.mubr.bf16.vlgmr.msra.gmra.mxu0 %v264_v17 }
 0x109   :  { %740 = vmatmul.mubr.bf16.vlgmr.msra.gmra.mxu1 %v266_v19 }
 0x1c8   :  { %v698_v23 = vpop.f32.mrf.mxu0 }
 0x1c9   :  { %v699_v25 = vadd.f32 %v698_v23, %v337_v21  ;;  %v741_v24 = vpop.f32.mrf.mxu1 }
 0x1ca   :  { %v700_v26 = vpop.f32.mrf.mxu0 }
 0x1cb   :  { %v742_v27 = vadd.f32 %v741_v24, %v699_v25  ;;  %v701_v28 = vadd.f32 %v700_v26, %v341_v22  ;;  %v743_v29 = vpop.f32.mrf.mxu1 }
 0x1cc   :  { %v702_v30 = vpop.f32.mrf.mxu0 }
 0x1cd   :  { %v750_v31 = vmax.f32 %v742_v27, -60.0  ;;  %v744_v32 = vadd.f32 %v743_v29, %v701_v28  ;;  %v703_v33 = vadd.f32 %v702_v30, %v337_v21  ;;  %v745_v34 = vpop.f32.mrf.mxu1 }
 0x1ce   :  { %v704_v35 = vpop.f32.mrf.mxu0 }
 0x1cf   :  { %v754_v36 = vsub.f32 0.0, %v750_v31  ;;  %v751_v37 = vmax.f32 %v744_v32, -60.0  ;;  %v746_v38 = vadd.f32 %v745_v34, %v703_v33  ;;  %v705_v12 = vadd.f32 %v704_v35, %v341_v22  ;;  %v747_v39 = vpop.f32.mrf.mxu1 }
 0x1d1   :  { %v758_v11 = vmul.f32 1.442695, %v754_v36  ;;  %v755_v15 = vsub.f32 0.0, %v751_v37  ;;  %v752_v40 = vmax.f32 %v746_v38, -60.0  ;;  %v748_v41 = vadd.f32 %v747_v39, %v705_v12 }
 0x1d3   :  { %1025 = vpow2.f32 %v758_v11  ;;  %v760_v42 = vmul.f32 1.442695, %v755_v15  ;;  %v756_v43 = vsub.f32 0.0, %v752_v40  ;;  %v753_v44 = vmax.f32 %v748_v41, -60.0 }
 0x1d5   :  { %1027 = vpow2.f32 %v760_v42  ;;  %v762_v45 = vmul.f32 1.442695, %v756_v43  ;;  %v757_v46 = vsub.f32 0.0, %v753_v44 }
 0x1d7   :  { %1029 = vpow2.f32 %v762_v45  ;;  %v764_v47 = vmul.f32 1.442695, %v757_v46 }
 0x1d9   :  { %1031 = vpow2.f32 %v764_v47 }
 0x1e0   :  { %v1026_v48 = vpop.eup %1025 }
 0x1e1   :  { %v766_v49 = vadd.f32 1.0, %v1026_v48 }
 0x1e2   :  { %v1028_v50 = vpop.eup %1027 }
 0x1e3   :  { %1033 = vrcp.f32 %v766_v49  ;;  %v767_v51 = vadd.f32 1.0, %v1028_v50 }
 0x1e4   :  { %v1030_v52 = vpop.eup %1029 }
 0x1e5   :  { %1035 = vrcp.f32 %v767_v51  ;;  %v768_v53 = vadd.f32 1.0, %v1030_v52 }
 0x1e6   :  { %v1032_v54 = vpop.eup %1031 }
 0x1e7   :  { %1037 = vrcp.f32 %v768_v53  ;;  %v769_v55 = vadd.f32 1.0, %v1032_v54 }
 0x1e9   :  { %1039 = vrcp.f32 %v769_v55 }
 0x1f0   :  { %v1034_v56 = vpop.eup %1033 }
 0x1f1   :  { %v774_v57 = vmul.f32 %v1034_v56, %v766_v49 }
 0x1f2   :  { %v1036_v58 = vpop.eup %1035 }
 0x1f3   :  { %v778_v59 = vsub.f32 2.0, %v774_v57  ;;  %v775_v60 = vmul.f32 %v1036_v58, %v767_v51 }
 0x1f4   :  { %v1038_v61 = vpop.eup %1037 }
 0x1f5   :  { %v779_v62 = vsub.f32 2.0, %v775_v60  ;;  %v776_v63 = vmul.f32 %v1038_v61, %v768_v53  ;;  %v782_v1 = vmul.f32 %v1034_v56, %v778_v59 }
 0x1f6   :  { %v1040_v0 = vpop.eup %1039 }
 0x1f7   :  { %v783_v2 = vmul.f32 %v1036_v58, %v779_v62  ;;  %v780_v3 = vsub.f32 2.0, %v776_v63  ;;  %v777_v4 = vmul.f32 %v1040_v0, %v769_v55 }
 0x1f9   :  { %v891_v5 = vpack.c.bf16 %v783_v2, %v782_v1  ;;  %v781_v6 = vsub.f32 2.0, %v777_v4  ;;  %v784_v7 = vmul.f32 %v1038_v61, %v780_v3 }
 0x1fb   :  { %798 = vst [vmem:[%s1176_s5] sm:$0xff] %v891_v5  ;;  %v785_v8 = vmul.f32 %v1040_v0, %v781_v6 }
 0x1fd   :  { %v892_v9 = vpack.c.bf16 %v785_v8, %v784_v7 }
 0x1ff   :  { %799 = vst [vmem:[%s1176_s5 + $0x8] sm:$0xff] %v892_v9 }
 0x200   :  { %804 = vsyncpa [#allocation3], 1 }
 0x201   :  { %805 = vsyncpa [#allocation5], 1 }

</bundles_post_ra>
